<compile_context>
chip_gen: v7x
topology: tpu7x:2x2x1
jax: 0.10.0
libtpu: 0.0.40
codegen_flags: <defaults>
</compile_context>

<pallas_src>
import functools

import jax
import jax.numpy as jnp
from jax.experimental import pallas as pl
from jax.experimental.pallas import tpu as pltpu


def _ceil_div(a, b):
    return -(-a // b)


def _round_up(a, b):
    return _ceil_div(a, b) * b


def _loss_kernel(logits_ref, targets_ref, mask_ref, out_ref, *,
                 total_rows, tile_rows):
    g = pl.program_id(0)

    # out_ref's block index is constant across the grid -> it stays resident
    # in VMEM and acts as the accumulator; written back to HBM once.
    @pl.when(g == 0)
    def _init():
        out_ref[...] = jnp.zeros_like(out_ref)

    x = logits_ref[...].astype(jnp.float32)   # (T, C) logits
    t = targets_ref[...].astype(jnp.float32)  # (T, C) binary target matrix
    m = mask_ref[...].astype(jnp.float32)     # (T, 1) loss mask * neg mask

    # Numerically-stable BCE with logits:
    #   max(x, 0) - x*t + log(1 + exp(-|x|))
    bce = jnp.maximum(x, 0.0) - x * t + jnp.log(1.0 + jnp.exp(-jnp.abs(x)))

    # Ragged tail: the last block may extend past the real row count; its
    # padded rows contain undefined data, so zero every accumulated quantity
    # for invalid rows (use where, not *0, so NaN garbage cannot propagate).
    if total_rows % tile_rows != 0:
        row_idx = (g * tile_rows
                   + jax.lax.broadcasted_iota(jnp.int32, (tile_rows, 1), 0))
        valid = row_idx < total_rows
        bce = jnp.where(valid, bce, 0.0)
        m = jnp.where(valid, m, 0.0)
        t = jnp.where(valid, t, 0.0)

    # Per-step reduction to three scalars (XLU/VPU have slack: HBM-bound).
    loss_s = jnp.sum(bce * m)                              # masked loss sum
    m_s = jnp.sum(m)                                       # mask sum
    row_t = jnp.sum(t, axis=-1, keepdims=True)             # (T, 1)
    un_s = jnp.sum(m * (row_t <= 0.0).astype(jnp.float32))  # unmatched spans

    # Scatter the three scalars into distinct lanes of the one-vreg
    # accumulator (lane 0 = loss, lane 1 = mask sum, lane 2 = unmatched).
    lane = jax.lax.broadcasted_iota(jnp.int32, out_ref.shape, 1)
    out_ref[...] += (jnp.where(lane == 0, loss_s, 0.0)
                     + jnp.where(lane == 1, m_s, 0.0)
                     + jnp.where(lane == 2, un_s, 0.0))


def base_loss_forward(logits, targets, mask, *,
                      target_block_bytes=2 * 1024 * 1024):
    """Masked BCE-with-logits loss pipeline.

    Returns (mean masked loss, unmatched_spans_count).
    """
    B, N, C = logits.shape
    assert targets.shape == (B, N, C)
    assert mask.shape == (B, N, 1)

    rows = B * N
    # Flatten to 2-D; keep native dtypes (no wrapper-side casts / pads).
    logits2 = logits.reshape(rows, C)
    targets2 = targets.reshape(rows, C)
    mask2 = mask.reshape(rows, 1)

    c_lanes = _round_up(C, 128)
    x_bytes = jnp.dtype(logits2.dtype).itemsize
    t_bytes = jnp.dtype(targets2.dtype).itemsize
    m_bytes = jnp.dtype(mask2.dtype).itemsize

    # Generation-aware VMEM budget (v7x-safe fallback of 64 MiB per core).
    try:
        vmem_cap = int(pltpu.get_tpu_info().vmem_capacity_bytes)
    except Exception:
        vmem_cap = 64 * 1024 * 1024
    vmem_budget = min(int(vmem_cap * 0.85), 100 * 1024 * 1024)

    # Row tile: aim for ~target_block_bytes of logits per block so DMA
    # per-step overhead is amortised even for small C; clamp to the problem
    # size and to the VMEM budget (inputs are double-buffered by Pallas).
    tile = max(8, target_block_bytes // (x_bytes * c_lanes))
    tile = max(8, min(_round_up(tile, 8), _round_up(rows, 8), 8192))

    def vmem_estimate(tr):
        return (2 * tr * c_lanes * x_bytes        # logits double buffer
                + 2 * tr * c_lanes * t_bytes      # targets double buffer
                + 2 * tr * 128 * m_bytes          # mask double buffer
                + 8 * 128 * 4                     # resident output/acc block
                + (1 << 20))                      # slack

    while vmem_estimate(tile) > vmem_budget and tile > 8:
        tile = max(8, _round_up(tile // 2, 8))

    num_tiles = _ceil_div(rows, tile)
    vmem_limit = int(min(vmem_cap - 2 * 1024 * 1024,
                         vmem_budget + 8 * 1024 * 1024))

    kernel = functools.partial(_loss_kernel, total_rows=rows, tile_rows=tile)

    out = pl.pallas_call(
        kernel,
        out_shape=jax.ShapeDtypeStruct((8, 128), jnp.float32),
        grid_spec=pltpu.PrefetchScalarGridSpec(
            num_scalar_prefetch=0,
            grid=(num_tiles,),
            in_specs=[
                pl.BlockSpec((tile, C), lambda g: (g, 0)),
                pl.BlockSpec((tile, C), lambda g: (g, 0)),
                pl.BlockSpec((tile, 1), lambda g: (g, 0)),
            ],
            out_specs=pl.BlockSpec((8, 128), lambda g: (0, 0)),
        ),
        compiler_params=pltpu.CompilerParams(
            dimension_semantics=("arbitrary",),
            vmem_limit_bytes=vmem_limit,
        ),
    )(logits2, targets2, mask2)

    loss_sum = out[0, 0]
    denom = jnp.maximum(out[0, 1] * C, 1.0)
    loss = loss_sum / denom
    # NOTE: unmatched count accumulated in f32 -> exact up to 2^24 rows.
    unmatched_count = jnp.round(out[0, 2]).astype(jnp.int32)
    return loss, unmatched_count


def _reference(logits, targets, mask):
    x = logits.astype(jnp.float32)
    t = targets.astype(jnp.float32)
    m = mask.astype(jnp.float32)
    bce = jnp.maximum(x, 0.0) - x * t + jnp.log(1.0 + jnp.exp(-jnp.abs(x)))
    masked = bce * m
    denom = jnp.maximum(jnp.sum(m) * x.shape[-1], 1.0)
    loss = jnp.sum(masked) / denom
    row_t_sum = jnp.sum(t, axis=-1, keepdims=True)
    unmatched = jnp.sum(m * (row_t_sum <= 0.0)).astype(jnp.int32)
    return loss, unmatched


if __name__ == "__main__":
    key = jax.random.PRNGKey(0)

    # (B, N, C) = (batch, num candidate spans, num classes)
    test_shapes = [
        (2, 8, 32),    # aligned small case (rows divide the tile)
        (2, 13, 20),   # ragged case exercising in-kernel tail masking
    ]

    for (B, N, C) in test_shapes:
        k1, k2, k3, key = jax.random.split(key, 4)
        logits = jax.random.normal(k1, (B, N, C), dtype=jnp.float32)
        # Binary target matrix (sparse positives).
        targets = (jax.random.uniform(k2, (B, N, C)) > 0.9).astype(jnp.float32)
        # Loss mask * negatives mask (some spans masked out).
        mask = (jax.random.uniform(k3, (B, N, 1)) > 0.25).astype(jnp.float32)

        loss, unmatched = base_loss_forward(logits, targets, mask)
        loss = jax.block_until_ready(loss)
        unmatched = jax.block_until_ready(unmatched)

        ref_loss, ref_unmatched = _reference(logits, targets, mask)
        assert jnp.allclose(loss, ref_loss, rtol=1e-4, atol=1e-5), (
            (B, N, C), loss, ref_loss)
        assert int(unmatched) == int(ref_unmatched), (
            (B, N, C), unmatched, ref_unmatched)

    print("KERNEL_OK")
</pallas_src>

<mosaic_0001>
module attributes {stable_mosaic.version = 11 : i64} {
  func.func @_loss_kernel(%arg0: i32, %arg1: memref<16x32xf32, #tpu.memory_space<vmem>>, %arg2: memref<16x32xf32, #tpu.memory_space<vmem>>, %arg3: memref<16x1xf32, #tpu.memory_space<vmem>>, %arg4: memref<8x128xf32, #tpu.memory_space<vmem>>) attributes {dimension_semantics = [#tpu.dimension_semantics<arbitrary>], iteration_bounds = array<i64: 1>, scalar_prefetch = 0 : i64, scratch_operands = 0 : i64, tpu.core_type = #tpu.core_type<tc>, window_params = [{transform_indices = @transform_0, window_bounds = array<i64: 16, 32>}, {transform_indices = @transform_1, window_bounds = array<i64: 16, 32>}, {transform_indices = @transform_2, window_bounds = array<i64: 16, 1>}, {pipeline_mode = #tpu.pipeline_mode<synchronous>, transform_indices = @transform_3, window_bounds = array<i64: 8, 128>}]} {
    %c0_i32 = arith.constant 0 : i32
    %0 = arith.cmpi eq, %arg0, %c0_i32 : i32
    %1 = arith.extui %0 : i1 to i32
    %c0_i32_0 = arith.constant 0 : i32
    %2 = arith.cmpi ne, %1, %c0_i32_0 : i32
    scf.if %2 {
      %cst_21 = arith.constant 0.000000e+00 : f32
      %60 = vector.broadcast %cst_21 : f32 to vector<8x128xf32>
      %c0_22 = arith.constant 0 : index
      %c0_23 = arith.constant 0 : index
      %61 = vector.load %arg4[%c0_22, %c0_23] : memref<8x128xf32, #tpu.memory_space<vmem>>, vector<8x128xf32>
      tpu.vector_store %arg4[%c0_22, %c0_23], %60 {strides = array<i32>} : memref<8x128xf32, #tpu.memory_space<vmem>>, vector<8x128xf32>,
    } else {
    }
    %c0 = arith.constant 0 : index
    %c0_1 = arith.constant 0 : index
    %3 = vector.load %arg1[%c0, %c0_1] : memref<16x32xf32, #tpu.memory_space<vmem>>, vector<16x32xf32>
    %c0_2 = arith.constant 0 : index
    %c0_3 = arith.constant 0 : index
    %4 = vector.load %arg2[%c0_2, %c0_3] : memref<16x32xf32, #tpu.memory_space<vmem>>, vector<16x32xf32>
    %c0_4 = arith.constant 0 : index
    %c0_5 = arith.constant 0 : index
    %5 = vector.load %arg3[%c0_4, %c0_5] : memref<16x1xf32, #tpu.memory_space<vmem>>, vector<16x1xf32>
    %cst = arith.constant 0.000000e+00 : f32
    %6 = vector.broadcast %cst : f32 to vector<16x32xf32>
    %7 = arith.maximumf %3, %6 : vector<16x32xf32>
    %8 = arith.mulf %3, %4 : vector<16x32xf32>
    %9 = arith.subf %7, %8 : vector<16x32xf32>
    %10 = math.absf %3 : vector<16x32xf32>
    %cst_6 = arith.constant 0.000000e+00 : f32
    %11 = vector.broadcast %cst_6 : f32 to vector<16x32xf32>
    %12 = arith.subf %11, %10 : vector<16x32xf32>
    %13 = math.exp %12 : vector<16x32xf32>
    %cst_7 = arith.constant 1.000000e+00 : f32
    %14 = vector.broadcast %cst_7 : f32 to vector<16x32xf32>
    %15 = arith.addf %14, %13 : vector<16x32xf32>
    %16 = math.log %15 : vector<16x32xf32>
    %17 = arith.addf %9, %16 : vector<16x32xf32>
    %18 = vector.broadcast %5 : vector<16x1xf32> to vector<16x32xf32>
    %19 = arith.mulf %17, %18 : vector<16x32xf32>
    %20 = vector.shape_cast %19 : vector<16x32xf32> to vector<1x16x32xf32>
    %cst_8 = arith.constant dense<0.000000e+00> : vector<1xf32>
    %21 = vector.multi_reduction <add>, %20, %cst_8 [1, 2] : vector<1x16x32xf32> to vector<1xf32>
    %22 = vector.shape_cast %21 : vector<1xf32> to vector<1x1x1xf32>
    %23 = vector.extract %22[0, 0, 0] : f32 from vector<1x1x1xf32>
    %24 = vector.shape_cast %5 : vector<16x1xf32> to vector<1x16x1xf32>
    %cst_9 = arith.constant dense<0.000000e+00> : vector<1xf32>
    %25 = vector.multi_reduction <add>, %24, %cst_9 [1, 2] : vector<1x16x1xf32> to vector<1xf32>
    %26 = vector.shape_cast %25 : vector<1xf32> to vector<1x1x1xf32>
    %27 = vector.extract %26[0, 0, 0] : f32 from vector<1x1x1xf32>
    %cst_10 = arith.constant dense<0.000000e+00> : vector<16xf32>
    %28 = vector.multi_reduction <add>, %4, %cst_10 [1] : vector<16x32xf32> to vector<16xf32>
    %29 = vector.shape_cast %28 : vector<16xf32> to vector<16x1xf32>
    %cst_11 = arith.constant 0.000000e+00 : f32
    %30 = vector.broadcast %cst_11 : f32 to vector<16x1xf32>
    %31 = arith.cmpf ole, %29, %30 : vector<16x1xf32>
    %32 = arith.extui %31 : vector<16x1xi1> to vector<16x1xi32>
    %33 = arith.sitofp %32 : vector<16x1xi32> to vector<16x1xf32>
    %34 = arith.mulf %5, %33 : vector<16x1xf32>
    %35 = vector.shape_cast %34 : vector<16x1xf32> to vector<1x16x1xf32>
    %cst_12 = arith.constant dense<0.000000e+00> : vector<1xf32>
    %36 = vector.multi_reduction <add>, %35, %cst_12 [1, 2] : vector<1x16x1xf32> to vector<1xf32>
    %37 = vector.shape_cast %36 : vector<1xf32> to vector<1x1x1xf32>
    %38 = vector.extract %37[0, 0, 0] : f32 from vector<1x1x1xf32>
    %39 = tpu.iota {dimensions = array<i32: 1>} : vector<8x128xi32>
    %c0_13 = arith.constant 0 : index
    %c0_14 = arith.constant 0 : index
    %40 = vector.load %arg4[%c0_13, %c0_14] : memref<8x128xf32, #tpu.memory_space<vmem>>, vector<8x128xf32>
    %c0_i32_15 = arith.constant 0 : i32
    %41 = vector.broadcast %c0_i32_15 : i32 to vector<8x128xi32>
    %42 = arith.cmpi eq, %39, %41 : vector<8x128xi32>
    %cst_16 = arith.constant 0.000000e+00 : f32
    %43 = vector.broadcast %23 : f32 to vector<8x128xf32>
    %44 = vector.broadcast %cst_16 : f32 to vector<8x128xf32>
    %45 = arith.select %42, %43, %44 : vector<8x128xi1>, vector<8x128xf32>
    %c1_i32 = arith.constant 1 : i32
    %46 = vector.broadcast %c1_i32 : i32 to vector<8x128xi32>
    %47 = arith.cmpi eq, %39, %46 : vector<8x128xi32>
    %cst_17 = arith.constant 0.000000e+00 : f32
    %48 = vector.broadcast %27 : f32 to vector<8x128xf32>
    %49 = vector.broadcast %cst_17 : f32 to vector<8x128xf32>
    %50 = arith.select %47, %48, %49 : vector<8x128xi1>, vector<8x128xf32>
    %51 = arith.addf %45, %50 : vector<8x128xf32>
    %c2_i32 = arith.constant 2 : i32
    %52 = vector.broadcast %c2_i32 : i32 to vector<8x128xi32>
    %53 = arith.cmpi eq, %39, %52 : vector<8x128xi32>
    %cst_18 = arith.constant 0.000000e+00 : f32
    %54 = vector.broadcast %38 : f32 to vector<8x128xf32>
    %55 = vector.broadcast %cst_18 : f32 to vector<8x128xf32>
    %56 = arith.select %53, %54, %55 : vector<8x128xi1>, vector<8x128xf32>
    %57 = arith.addf %51, %56 : vector<8x128xf32>
    %58 = arith.addf %40, %57 : vector<8x128xf32>
    %c0_19 = arith.constant 0 : index
    %c0_20 = arith.constant 0 : index
    %59 = vector.load %arg4[%c0_19, %c0_20] : memref<8x128xf32, #tpu.memory_space<vmem>>, vector<8x128xf32>
    tpu.vector_store %arg4[%c0_19, %c0_20], %58 {strides = array<i32>} : memref<8x128xf32, #tpu.memory_space<vmem>>, vector<8x128xf32>,
    return
  }
  func.func @transform_0(%arg0: i32) -> (i32, i32) {
    %c0_i32 = arith.constant 0 : i32
    %c0_i32_0 = arith.constant 0 : i32
    return %arg0, %c0_i32 : i32, i32
  }
  func.func @transform_1(%arg0: i32) -> (i32, i32) {
    %c0_i32 = arith.constant 0 : i32
    %c0_i32_0 = arith.constant 0 : i32
    return %arg0, %c0_i32 : i32, i32
  }
  func.func @transform_2(%arg0: i32) -> (i32, i32) {
    %c0_i32 = arith.constant 0 : i32
    %c0_i32_0 = arith.constant 0 : i32
    return %arg0, %c0_i32 : i32, i32
  }
  func.func @transform_3(%arg0: i32) -> (i32, i32) {
    %c0_i32 = arith.constant 0 : i32
    %c0_i32_0 = arith.constant 0 : i32
    %c0_i32_1 = arith.constant 0 : i32
    return %c0_i32, %c0_i32_0 : i32, i32
  }
}

</mosaic_0001>

<bundles_post_ra>
// kernel: tpu_custom_call.1
= control target key start
LH: loop header
LB: loop body
LE: loop exit
PB: predicated region body
PF: predicated region fallthrough
CT: control target
= control target key end

     0   :  { %8 = vsyncpa [#allocation3], 0  ;;  %s299_s0 = inlined_call_operand.vmem [shape: f32[16,32], index: 0, kind: input, shape index: {}]   ;;  %s300_s1 = inlined_call_operand.hbm [shape: f32[16,32], index: 1, kind: input, shape index: {}]   ;;  %s301_s2 = inlined_call_operand.vmem [shape: f32[16,1], index: 2, kind: input, shape index: {}]   ;;  %s302_s3 = inlined_call_operand.hbm [shape: f32[8,128], index: 3, kind: output, shape index: {}]  }
   0x1   :  { %9 = vsyncpa [#allocation4], 0  ;;  %s229_s12 = smov [#allocation2]   ;;  %s181_s16 = scalar_lea.hbm %s300_s1, 256 }
   0x2   :  { %s17_s13 = sshll.u32 %s229_s12, 4  ;;  %p182_p0 = scmp.ne.s32.totalorder %s300_s1, %s181_s16  ;;  %s18_s13 = int_to_ptr.vmem [resolvable:$true] %s17_s13 }
   0x3   :  { %p185_p1 = scmp.lt.u32.totalorder %s181_s16, %s300_s1 }
   0x5   :  { %p187_p2 = pnand %p185_p1, %p182_p0 }
   0x7   :  { %190 = shalt.err (!%p187_p2)
}
   0x8   :  { %s191_s21 = scalar_lea.vmem %s18_s13, 256  ;;  %p196_p4 = scmp.lt.s32.totalorder %s18_s13, %s18_s13 }
   0x9   :  { %p192_p3 = scmp.ne.s32.totalorder %s18_s13, %s191_s21  ;;  %p197_p5 = scmp.lt.s32.totalorder %s191_s21, %s191_s21 }
   0xb   :  { %p198_p6 = por %p197_p5, %p196_p4 }
   0xd   :  { %p199_p7 = pnand %p198_p6, %p192_p3 }
   0xf   :  { %202 = shalt.err (!%p199_p7)
}
  0x10   :  { %s230_s22 = smov 128   ;;  %s231_s23 = smov 8  }
  0x11   :  { %23 = dma.hbm_to_vmem [thread:$0]  %s300_s1, 256, %s18_s13, [#allocation3], %s230_s22, %s230_s22, %s231_s23  }
  0x12   :  { %225 = dma.done.wait [#allocation3], 256  }
  0x13   :  { %226 = vsyncadd [#allocation3], 4294967040  ;;  %v232_v0 = vmov 0   ;;  %vm74_vm0 = vcmask 261120   ;;  %v36_v1 = vld [vmem:[#allocation2] sm:$0xff]  ;;  %v37_v4 = vld [vmem:[#allocation2 + $0x8] sm:$0xff] }
  0x14   :  { %171 = vset.pattern.permute.xlu1 %v232_v0  ;;  %172 = vset.pattern.permute.xlu0 %v232_v0  ;;  %v38_v2 = vld [vmem:[%s301_s2] sm:$0xff]  ;;  %v100_v3 = vsel %vm74_vm0, %v36_v1, 0.0  ;;  %v39_v5 = vld [vmem:[%s301_s2 + $0x8] sm:$0xff]  ;;  %v103_v6 = vsel %vm74_vm0, %v37_v4, 0.0  ;;  %vm87_vm1 = vcmask 7168   ;;  %v233_v42 = vmov 0.0  }
  0x15   :  { %64 = vperm.xlu1 %171, %v38_v2   ;;  %101 = vadd.xlane.f32.xlu0 %v100_v3  ;;  %v88_v7 = vsel %vm87_vm1, %v38_v2, 0.0  ;;  %v89_v8 = vsel %vm87_vm1, %v39_v5, 0.0  ;;  %v34_v10 = vld [vmem:[%s299_s0] sm:$0xff]  ;;  %v35_v12 = vld [vmem:[%s299_s0 + $0x8] sm:$0xff]  ;;  %s234_s7 = smov [#allocation5]  }
  0x16   :  { %v90_v9 = vadd.f32 %v89_v8, %v88_v7  ;;  %v46_v11 = vand.u32 2147483647, %v34_v10  ;;  %v47_v14 = vand.u32 2147483647, %v35_v12  ;;  %v40_v22 = vmax.f32 %v34_v10, 0.0  ;;  %s148_s8 = sshll.u32 %s234_s7, 4  ;;  %s149_s8 = int_to_ptr.vmem [resolvable:$true] %s148_s8 }
  0x17   :  { %v42_v23 = vmul.f32 %v36_v1, %v34_v10  ;;  %v43_v26 = vmul.f32 %v37_v4, %v35_v12  ;;  %v41_v28 = vmax.f32 %v35_v12, 0.0  ;;  %v126_v8 = vlaneseq  ;;  %s203_s9 = scalar_lea.vmem %s149_s8, 128  ;;  %p208_p9 = scmp.lt.s32.totalorder %s149_s8, %s149_s8 }
  0x18   :  { %v48_v13 = vsub.f32 0.0, %v46_v11  ;;  %v49_v16 = vsub.f32 0.0, %v47_v14  ;;  %p204_p8 = scmp.ne.s32.totalorder %s149_s8, %s203_s9  ;;  %p209_p10 = scmp.lt.s32.totalorder %s203_s9, %s203_s9 }
  0x19   :  { %69 = vperm.xlu1 %171, %v39_v5   ;;  %104 = vadd.xlane.f32.xlu0 %v103_v6  ;;  %v44_v25 = vsub.f32 %v40_v22, %v42_v23  ;;  %v45_v31 = vsub.f32 %v41_v28, %v43_v26 }
  0x1a   :  { %v50_v15 = vmul.f32 1.442695, %v48_v13  ;;  %v52_v17 = vmul.f32 1.442695, %v49_v16  ;;  %p210_p11 = por %p209_p10, %p208_p9 }
  0x1c   :  { %173 = vpow2.f32 %v50_v15  ;;  %p211_p12 = pnand %p210_p11, %p204_p8 }
  0x1d   :  { %175 = vpow2.f32 %v52_v17 }
  0x26   :  { %v174_v18 = vpop.eup %173 }
  0x27   :  { %v54_v19 = vadd.f32 1.0, %v174_v18  ;;  %v176_v20 = vpop.eup %175 }
  0x28   :  { %v55_v21 = vadd.f32 1.0, %v176_v20 }
  0x29   :  { %177 = vlog2.f32 %v54_v19 }
  0x2a   :  { %179 = vlog2.f32 %v55_v21 }
  0x33   :  { %v178_v24 = vpop.eup %177 }
  0x34   :  { %v57_v27 = vmul.f32 0.6931472, %v178_v24  ;;  %v180_v29 = vpop.eup %179 }
  0x35   :  { %v59_v32 = vmul.f32 0.6931472, %v180_v29 }
  0x36   :  { %v60_v30 = vadd.f32 %v57_v27, %v44_v25 }
  0x37   :  { %v61_v35 = vadd.f32 %v59_v32, %v45_v31 }
  0x3d   :  { %91 = vadd.xlane.f32.xlu1 %v90_v9  ;;  %v127_v9 = vand.u32 127, %v126_v8 }
  0x3f   :  { %vm129_vm4 = vcmp.eq.s32.totalorder %v127_v9, 0  ;;  %vm132_vm5 = vcmp.eq.s32.totalorder %v127_v9, 1  ;;  %vm136_vm6 = vcmp.eq.s32.totalorder %v127_v9, 2 }
  0x94   :  { %v65_v33 = vpop.permute.xlu1 %64 }
  0x95   :  { %v72_v34 = vmul.f32 %v65_v33, %v60_v30 }
  0x97   :  { %v75_v38 = vsel %vm74_vm0, %v72_v34, 0.0 }
  0x98   :  { %v70_v36 = vpop.permute.xlu1 %69 }
  0x99   :  { %v73_v37 = vmul.f32 %v70_v36, %v61_v35 }
  0x9b   :  { %v76_v39 = vsel %vm74_vm0, %v73_v37, 0.0 }
  0x9c   :  { %v77_v40 = vadd.f32 %v76_v39, %v75_v38 }
  0x9e   :  { %78 = vadd.xlane.f32.xlu0 %v77_v40 }
  0xa2   :  { %v102_v41 = vpop.xlane.xlu0 %101 }
  0xa3   :  { %vm106_vm2 = vcmp.le.f32.partialorder %v102_v41, 0.0 }
  0xa4   :  { %v157_v43 = vsel %vm106_vm2, 1.0, %v233_v42 }
  0xa5   :  { %v112_v45 = vmul.f32 %v157_v43, %v38_v2 }
  0xa6   :  { %v105_v44 = vpop.xlane.xlu0 %104 }
  0xa7   :  { %vm107_vm3 = vcmp.le.f32.partialorder %v105_v44, 0.0  ;;  %v114_v48 = vsel %vm87_vm1, %v112_v45, 0.0 }
  0xa8   :  { %v158_v46 = vsel %vm107_vm3, 1.0, %v233_v42 }
  0xa9   :  { %v113_v47 = vmul.f32 %v158_v46, %v39_v5 }
  0xab   :  { %v115_v49 = vsel %vm87_vm1, %v113_v47, 0.0 }
  0xac   :  { %v116_v50 = vadd.f32 %v115_v49, %v114_v48 }
  0xae   :  { %117 = vadd.xlane.f32.xlu0 %v116_v50 }
  0xca   :  { %v92_v51 = vpop.xlane.xlu1 %91 }
  0xcb   :  { %v93_v52 = vrot.slane %v92_v51, 4 }
  0xcd   :  { %v94_v53 = vadd.f32 %v93_v52, %v92_v51 }
  0xcf   :  { %v95_v54 = vrot.slane %v94_v53, 2 }
  0xd1   :  { %v96_v57 = vadd.f32 %v95_v54, %v94_v53 }
  0xd3   :  { %v97_v60 = vrot.slane %v96_v57, 1 }
  0xd5   :  { %v98_v63 = vadd.f32 %v97_v60, %v96_v57 }
 0x12b   :  { %v79_v55 = vpop.xlane.xlu0 %78 }
 0x12c   :  { %v80_v56 = vrot.slane %v79_v55, 4 }
 0x12e   :  { %v81_v58 = vadd.f32 %v80_v56, %v79_v55 }
 0x130   :  { %v82_v59 = vrot.slane %v81_v58, 2 }
 0x132   :  { %v83_v61 = vadd.f32 %v82_v59, %v81_v58 }
 0x134   :  { %v84_v62 = vrot.slane %v83_v61, 1 }
 0x136   :  { %v85_v0 = vadd.f32 %v84_v62, %v83_v61 }
 0x138   :  { %159 = vpush %v85_v0 }
 0x139   :  { %161 = vpush %v98_v63 }
 0x13b   :  { %v118_v1 = vpop.xlane.xlu0 %117 }
 0x13c   :  { %v119_v2 = vrot.slane %v118_v1, 4 }
 0x13e   :  { %v120_v3 = vadd.f32 %v119_v2, %v118_v1 }
 0x140   :  { %v121_v4 = vrot.slane %v120_v3, 2 }
 0x142   :  { %v122_v5 = vadd.f32 %v121_v4, %v120_v3 }
 0x144   :  { %v123_v6 = vrot.slane %v122_v5, 1 }
 0x146   :  { %v124_v7 = vadd.f32 %v123_v6, %v122_v5 }
 0x148   :  { %163 = vpush %v124_v7 }
 0x169   :  { %s160_s0 = spop %159 }
 0x16a   :  { %s162_s2 = spop %161  ;;  %v130_v10 = vstv %s160_s0 }
 0x16b   :  { %v133_v11 = vstv %s162_s2  ;;  %v131_v12 = vsel %vm129_vm4, %v130_v10, 0.0 }
 0x16c   :  { %v134_v13 = vsel %vm132_vm5, %v133_v11, 0.0 }
 0x16d   :  { %v135_v14 = vadd.f32 %v134_v13, %v131_v12 }
 0x179   :  { %s164_s6 = spop %163 }
 0x17a   :  { %v137_v15 = vstv %s164_s6 }
 0x17b   :  { %v138_v16 = vsel %vm136_vm6, %v137_v15, 0.0 }
 0x17c   :  { %v139_v17 = vadd.f32 %v138_v16, %v135_v14 }
 0x17e   :  { %141 = vst [vmem:[#allocation5] sm:$0xff] %v139_v17 }
 0x17f   :  { %214 = shalt.err (!%p211_p12)
}
 0x180   :  { %s215_s12 = scalar_lea.hbm %s302_s3, 128 }
 0x181   :  { %p216_p13 = scmp.ne.s32.totalorder %s302_s3, %s215_s12  ;;  %p219_p0 = scmp.lt.u32.totalorder %s215_s12, %s302_s3 }
 0x183   :  { %p221_p1 = pnand %p219_p0, %p216_p13 }
 0x185   :  { %224 = shalt.err (!%p221_p1)
}
 0x186   :  { %151 = dma.vmem_to_hbm [thread:$0]  %s149_s8, 128, %s302_s3, [#allocation4]  }
 0x187   :  { %227 = dma.done.wait [#allocation4], 128  }
 0x188   :  { %228 = vsyncadd [#allocation4], 4294967168 }
 0x189   :  { %155 = vsyncpa [#allocation3], 1 }
 0x18a   :  { %156 = vsyncpa [#allocation4], 1 }

</bundles_post_ra>
